<compile_context>
chip_gen: v7x
topology: tpu7x:2x2x1
jax: 0.10.0
libtpu: 0.0.40
codegen_flags: <defaults>
</compile_context>

<pallas_src>
import math

import jax
import jax.numpy as jnp
from jax.experimental import pallas as pl
from jax.experimental.pallas import tpu as pltpu

_SQRT_2_OVER_PI = math.sqrt(2.0 / math.pi)
_INNER_COEF = _SQRT_2_OVER_PI * 0.044715          # folded constant (1 fewer vmul)
_TARGET_BLOCK_BYTES = 4 * 1024 * 1024             # ~4 MiB blocks
_VMEM_LIMIT_BYTES = 32 * 1024 * 1024              # fits 2 ops x 2 bufs x 4 MiB everywhere


def _new_gelu_kernel(x_ref, o_ref):
    # Reproduces the PyTorch module exactly:
    #   0.5 * x * (1 + tanh(sqrt(2/pi) * (x * 0.044715 * x**3)))
    # i.e. sqrt(2/pi)*0.044715 * x^4 inside the tanh (the module multiplies).
    x = x_ref[...].astype(jnp.float32)             # widen: v5e VPU/EUP have no bf16
    x2 = x * x
    inner = _INNER_COEF * x2 * x2                  # == sqrt(2/pi) * x * 0.044715 * x^3
    y = 0.5 * x * (1.0 + jnp.tanh(inner))          # tanh -> EUP slot (free wrt VALU)
    o_ref[...] = y.astype(o_ref.dtype)


def _sublane_multiple(dtype) -> int:
    # Min second-to-last tile dim: 8 (4-byte), 16 (2-byte), 32 (1-byte) dtypes.
    itemsize = jnp.dtype(dtype).itemsize
    return max(8, 32 // max(itemsize, 1))


def _choose_slab(n: int, sub: int):
    """Lane-dense 2-D view [rows, width] of a flat array; n must be % 128 == 0.

    Prefer the widest power-of-two width that still leaves >= 2*sub rows (so the
    grid can be split into >= 2 balanced, sublane-aligned blocks for the v7x
    megacore); otherwise the widest width that divides n.
    """
    widths = (8192, 4096, 2048, 1024, 512, 256, 128)
    divisors = [w for w in widths if n % w == 0]
    for w in divisors:
        if n // w >= 2 * sub:
            return n // w, w
    w = divisors[0]
    return n // w, w


def _grid_params(rows: int, width: int, sub: int, itemsize: int):
    """Pick (tile_rows, num_blocks) for the row (grid) axis."""
    if rows <= sub:
        # Tiny array: one block spanning the whole row extent.
        return rows, 1
    # ~4 MiB, sublane-aligned blocks.
    tile_rows = max(sub, (_TARGET_BLOCK_BYTES // (width * itemsize)) // sub * sub)
    tile_rows = min(tile_rows, pl.cdiv(rows, sub) * sub)
    num_blocks = pl.cdiv(rows, tile_rows)
    if rows >= 2 * sub:
        # v7x megacore: >= 2 near-balanced blocks, even count, so both
        # TensorCores split the parallel axis evenly.  No-op on 1-TC chips.
        num_blocks = max(2, num_blocks)
        if num_blocks % 2:
            num_blocks += 1
        tile_rows = max(sub, pl.cdiv(pl.cdiv(rows, num_blocks), sub) * sub)
        num_blocks = pl.cdiv(rows, tile_rows)
    return tile_rows, num_blocks


def _new_gelu_aligned(flat: jax.Array, *, donate: bool = False) -> jax.Array:
    """Kernel on a flat array whose size is a multiple of 128 (zero-copy reshape)."""
    n = flat.size
    dtype = flat.dtype
    itemsize = jnp.dtype(dtype).itemsize
    sub = _sublane_multiple(dtype)
    rows, width = _choose_slab(n, sub)
    slab = flat.reshape(rows, width)               # contiguous reshape: no data movement
    tile_rows, num_blocks = _grid_params(rows, width, sub, itemsize)

    out = pl.pallas_call(
        _new_gelu_kernel,
        out_shape=jax.ShapeDtypeStruct((rows, width), dtype),
        grid_spec=pltpu.PrefetchScalarGridSpec(
            num_scalar_prefetch=0,
            grid=(num_blocks,),
            in_specs=[pl.BlockSpec((tile_rows, width), lambda i: (i, 0))],
            out_specs=pl.BlockSpec((tile_rows, width), lambda i: (i, 0)),
        ),
        compiler_params=pltpu.CompilerParams(
            dimension_semantics=("parallel",),     # megacore-shardable grid axis (v7x)
            vmem_limit_bytes=_VMEM_LIMIT_BYTES,    # room for 4 MiB double-buffered blocks
        ),
        cost_estimate=pl.CostEstimate(
            flops=7 * n,
            transcendentals=n,
            bytes_accessed=2 * n * itemsize,
        ),
        input_output_aliases={0: 0} if donate else {},
    )(slab)
    return out.reshape(-1)


def new_gelu(x: jax.Array, *, donate: bool = False) -> jax.Array:
    """NewGelu forward.  Set donate=True only if the caller donates x's buffer."""
    orig_shape = x.shape
    n = x.size
    if n == 0:
        return x

    flat = x.reshape(-1)
    n_main = (n // 128) * 128
    if n_main == n:
        # Fast path (typical NN activation sizes): zero pad, zero extra passes.
        return _new_gelu_aligned(flat, donate=donate).reshape(orig_shape)

    if n_main == 0:
        # Fewer than 128 elements total: not worth a kernel launch.
        return _new_gelu_reference(x)

    # Ragged tail (< 128 elements): kernel on the aligned prefix, plain jnp on
    # the tail — avoids the previous full-tensor pad + trailing-slice passes.
    head = _new_gelu_aligned(flat[:n_main], donate=False)
    tail = _new_gelu_reference(flat[n_main:])
    return jnp.concatenate([head, tail]).reshape(orig_shape)


def _new_gelu_reference(x: jax.Array) -> jax.Array:
    # Direct transcription of the PyTorch module's forward (multiplicative form).
    return 0.5 * x * (1.0 + jnp.tanh(
        _SQRT_2_OVER_PI * (x * 0.044715 * jnp.power(x, 3))))


if __name__ == "__main__":
    key = jax.random.PRNGKey(0)
    x = jax.random.normal(key, (2, 4, 16, 16), dtype=jnp.float32)

    y = jax.block_until_ready(new_gelu(x))

    y_ref = _new_gelu_reference(x)
    assert y.shape == x.shape and y.dtype == x.dtype
    assert jnp.allclose(y, y_ref, atol=1e-5, rtol=1e-5)

    print("KERNEL_OK")
</pallas_src>

<mosaic_0001>
module attributes {stable_mosaic.version = 11 : i64} {
  func.func @_new_gelu_kernel(%arg0: i32, %arg1: memref<8x128xf32, #tpu.memory_space<vmem>>, %arg2: memref<8x128xf32, #tpu.memory_space<vmem>>) attributes {dimension_semantics = [#tpu.dimension_semantics<parallel>], iteration_bounds = array<i64: 2>, scalar_prefetch = 0 : i64, scratch_operands = 0 : i64, tpu.core_type = #tpu.core_type<tc>, window_params = [{transform_indices = @transform_0, window_bounds = array<i64: 8, 128>}, {transform_indices = @transform_1, window_bounds = array<i64: 8, 128>}]} {
    %c0 = arith.constant 0 : index
    %c0_0 = arith.constant 0 : index
    %0 = vector.load %arg1[%c0, %c0_0] : memref<8x128xf32, #tpu.memory_space<vmem>>, vector<8x128xf32>
    %1 = arith.mulf %0, %0 : vector<8x128xf32>
    %cst = arith.constant 0.0356774069 : f32
    %2 = vector.broadcast %cst : f32 to vector<8x128xf32>
    %3 = arith.mulf %2, %1 : vector<8x128xf32>
    %4 = arith.mulf %3, %1 : vector<8x128xf32>
    %cst_1 = arith.constant 5.000000e-01 : f32
    %5 = vector.broadcast %cst_1 : f32 to vector<8x128xf32>
    %6 = arith.mulf %5, %0 : vector<8x128xf32>
    %7 = math.tanh %4 : vector<8x128xf32>
    %cst_2 = arith.constant 1.000000e+00 : f32
    %8 = vector.broadcast %cst_2 : f32 to vector<8x128xf32>
    %9 = arith.addf %8, %7 : vector<8x128xf32>
    %10 = arith.mulf %6, %9 : vector<8x128xf32>
    %c0_3 = arith.constant 0 : index
    %c0_4 = arith.constant 0 : index
    %11 = vector.load %arg2[%c0_3, %c0_4] : memref<8x128xf32, #tpu.memory_space<vmem>>, vector<8x128xf32>
    tpu.vector_store %arg2[%c0_3, %c0_4], %10 {strides = array<i32>} : memref<8x128xf32, #tpu.memory_space<vmem>>, vector<8x128xf32>,
    return
  }
  func.func @transform_0(%arg0: i32) -> (i32, i32) {
    %c0_i32 = arith.constant 0 : i32
    %c0_i32_0 = arith.constant 0 : i32
    return %arg0, %c0_i32 : i32, i32
  }
  func.func @transform_1(%arg0: i32) -> (i32, i32) {
    %c0_i32 = arith.constant 0 : i32
    %c0_i32_0 = arith.constant 0 : i32
    return %arg0, %c0_i32 : i32, i32
  }
}

</mosaic_0001>

<bundles_post_ra>
// kernel: tpu_custom_call.1
= control target key start
LH: loop header
LB: loop body
LE: loop exit
PB: predicated region body
PF: predicated region fallthrough
CT: control target
= control target key end

     0   :  { %6 = vsyncpa [#allocation3], 0  ;;  %s556_s0 = inlined_call_operand.hbm [shape: f32[16,128], index: 0, kind: input, shape index: {}]   ;;  %s557_s1 = inlined_call_operand.hbm [shape: f32[16,128], index: 1, kind: output, shape index: {}]  }
   0x1   :  { %8 = vsyncpa [#allocation3 + $0x1], 0 }
   0x2   :  { %9 = vsyncpa [#allocation4], 0 }
   0x3   :  { %11 = vsyncpa [#allocation4 + $0x1], 0  ;;  %s395_s6 = smov 0   ;;  %s397_s7 = smov 0  }
   0x4   :  { %s399_s8 = smov 0   ;;  %s401_s9 = smov 0  }
   0x5 LB: > { %s416_s10 = sadd.s32 4294967295, %s381_s9   ;;  %s225_s11 = sadd.s32 4294967294, %s381_s9   ;;  %s381_s9 = sphi %s401_s9, %s572_s9   ;;  %s377_s8 = sphi %s399_s8, %s571_s8   ;;  %s373_s7 = sphi %s397_s7, %s570_s7   ;;  %s369_s6 = sphi %s395_s6, %s569_s6  }
   0x6   : > { %s420_s12 = sadd.s32 1, %s381_s9   ;;  %s24_s13 = sadd.s32 1, %s377_s8 }
   0x7   : > { %s21_s14 = ssub.s32 %s381_s9, %s420_s12  ;;  %p31_p0 = scmp.ne.s32.totalorder %s377_s8, %s373_s7 }
   0x8   : > { %p22_p1 = scmp.eq.s32.totalorder %s21_s14, 0  ;;  %p32_p2 = scmp.eq.s32.totalorder %s381_s9, 0 }
   0x9   : > { %p37_p3 = scmp.ne.s32.totalorder %s373_s7, %s369_s6  ;;  %p38_p4 = scmp.eq.s32.totalorder %s416_s10, 0 }
   0xa   : > { %s432_s15 = scalar_select %p22_p1, %s377_s8, %s24_s13  }
   0xb   : > { %p434_p5 = por %p32_p2, %p31_p0  ;;  %p438_p6 = por %p38_p4, %p37_p3 }
   0xc   : > { %p61_p7 = scmp.eq.s32.totalorder %s416_s10, 1  ;;  %p67_p8 = scmp.eq.s32.totalorder %s225_s11, 1 }
   0xd   : > { %p249_p10 = scmp.lt.s32.totalorder %s381_s9, 2  ;;  %s87_s20 = sand.u32 1, %s377_s8  }
   0xe   : > { %p445_p11 = por %p61_p7, %p31_p0  ;;  %p449_p12 = por %p67_p8, %p37_p3 }
   0xf   : > { %s229_s21 = sshll.u32 %s381_s9, 7  ;;  %s228_s22 = sshll.u32 %s87_s20, 3 }
  0x10   : > { %s561_s18 = scalar_select %p445_p11, 1, 0 }
  0x11   : > { %s562_s19 = scalar_select %p449_p12, 1, 0 }
  0x12   : > { %s458_s25 = scalar_lea.hbm %s556_s0, %s229_s21  ;;  %s91_s26 = scalar_lea.vmem [#allocation2], %s228_s22 }
  0x13   : > { %s98_s27 = sshll.u32 %s91_s26, 4  ;;  %p462_p13 = pnand %p249_p10, %p434_p5  ;;  %s466_s27 = int_to_ptr.vmem [resolvable:$true] %s98_s27 }
  0x14   : > { %s88_s29 = scalar_lea.sflag [#allocation3], %s87_s20  ;;  %s285_s30 = scalar_lea.hbm %s458_s25, 128 }
  0x15   : > { %p286_p2 = scmp.ne.s32.totalorder %s458_s25, %s285_s30  ;;  %p287_p3 = pneg %p462_p13 }
  0x16   : > { %s290_s4 = scalar_lea.hbm %s556_s0, 256  ;;  %p291_p5 = scmp.lt.u32.totalorder %s458_s25, %s556_s0 }
  0x17   : > { %p288_p4 = pnand %p287_p3, %p286_p2  ;;  %p292_p8 = scmp.lt.u32.totalorder %s290_s4, %s285_s30 }
  0x18   : > { %p294_p9 = scmp.lt.u32.totalorder %s285_s30, %s458_s25 }
  0x19   : > { %p289_p7 = pneg %p288_p4  ;;  %p293_p10 = por %p292_p8, %p291_p5 }
  0x1b   : > { %p295_p0 = por %p294_p9, %p293_p10 }
  0x1d   : > { %p296_p1 = pnand %p295_p0, %p289_p7 }
  0x1f   : > { %299 = shalt.err (!%p296_p1)
}
  0x20   : > { %s300_s13 = scalar_lea.vmem %s466_s27, 128  ;;  %s383_s14 = smov [#allocation2]  }
  0x21   : > { %p301_p2 = scmp.ne.s32.totalorder %s466_s27, %s300_s13  ;;  %s305_s16 = sshll.u32 %s383_s14, 4  ;;  %s306_s16 = int_to_ptr.vmem [resolvable:$false] %s305_s16 }
  0x22   : > { %s307_s20 = scalar_lea.vmem %s306_s16, 256  ;;  %p308_p11 = scmp.lt.s32.totalorder %s466_s27, %s306_s16 }
  0x23   : > { %p303_p4 = pnand %p301_p2, %p287_p3  ;;  %p309_p5 = scmp.lt.s32.totalorder %s307_s20, %s300_s13 }
  0x25   : > { %p304_p12 = pneg %p303_p4  ;;  %p310_p8 = por %p309_p5, %p308_p11 }
  0x27   : > { %p311_p9 = pnand %p310_p8, %p304_p12 }
  0x29   : > { %314 = shalt.err (!%p311_p9)
}
  0x2a   : > { %244 = dma.hbm_to_vmem [thread:$0]  (!%p462_p13), %s458_s25, 128, %s466_s27, %s88_s29  }
  0x2b   : > { %p564_p0 = scmp.lt.s32.totalorder %s381_s9, 3  ;;  %p565_p1 = scmp.ge.s32.totalorder %s381_s9, 1 }
  0x2d   : > { %p104_p3 = pnand %p565_p1, %p564_p0 }
  0x2e   : > { %s500_s21 = sand.u32 (!%p104_p3), 1, %s373_s7  }
  0x2f   : > { %107 = sbr.rel (%p104_p3) target bundleno = 91 (0x5b), region = 24  ;;  %s231_s22 = sshll.u32 (!%p104_p3), %s500_s21, 3 }
  0x30   : > { %s110_s23 = scalar_lea.sflag (!%p104_p3), [#allocation3], %s500_s21  ;;  %s113_s24 = scalar_lea.vmem (!%p104_p3), [#allocation2], %s231_s22 }
  0x36   : > { %360 = dma.done.wait (%p438_p6), %s110_s23, 128  }
  0x37   : > { %362 = vsyncadd (%p438_p6), %s110_s23, 4294967168  ;;  %v132_v0 = vld [vmem:[%s113_s24] sm:$0xff]  ;;  %s131_s25 = scalar_lea.vmem [#allocation5], %s231_s22  ;;  %s234_s27 = sshll.u32 %s416_s10, 7 }
  0x38   : > { %v133_v1 = vmul.f32 %v132_v0, %v132_v0  ;;  %v136_v4 = vmul.f32 0.5, %v132_v0  ;;  %s155_s26 = sshll.u32 %s131_s25, 4  ;;  %s514_s29 = scalar_lea.hbm %s557_s1, %s234_s27  ;;  %s509_s26 = int_to_ptr.vmem [resolvable:$true] %s155_s26 }
  0x39   : > { %s142_s30 = scalar_lea.sflag [#allocation4], %s500_s21  ;;  %s315_s2 = scalar_lea.vmem %s509_s26, 128 }
  0x3a   : > { %v134_v2 = vmul.f32 0.035677407, %v133_v1  ;;  %p316_p6 = scmp.ne.s32.totalorder %s509_s26, %s315_s2  ;;  %p566_p11 = scmp.ne.s32.totalorder %s561_s18, 0 }
  0x3b   : > { %s384_s10 = smov [#allocation5]  }
  0x3c   : > { %v135_v3 = vmul.f32 %v134_v2, %v133_v1  ;;  %p317_p12 = pnand %p316_p6, %p566_p11  ;;  %s319_s3 = sshll.u32 %s384_s10, 4  ;;  %s320_s3 = int_to_ptr.vmem [resolvable:$false] %s319_s3 }
  0x3d   : > { %s321_s4 = scalar_lea.vmem %s320_s3, 256  ;;  %p322_p7 = scmp.lt.s32.totalorder %s509_s26, %s320_s3 }
  0x3e   : > { %283 = vtanh.f32 %v135_v3  ;;  %p318_p13 = pneg %p317_p12  ;;  %p323_p10 = scmp.lt.s32.totalorder %s321_s4, %s315_s2 }
  0x40   : > { %p324_p2 = por %p323_p10, %p322_p7 }
  0x42   : > { %p325_p4 = pnand %p324_p2, %p318_p13 }
  0x48   : > { %v284_v5 = vpop.eup %283 }
  0x49   : > { %v138_v6 = vadd.f32 1.0, %v284_v5 }
  0x4b   : > { %v139_v7 = vmul.f32 %v138_v6, %v136_v4 }
  0x4d   : > { %140 = vst [vmem:[%s131_s25] sm:$0xff] %v139_v7 }
  0x4e   : > { %328 = shalt.err (!%p325_p4)
}
  0x4f   : > { %s329_s5 = scalar_lea.hbm %s514_s29, 128  ;;  %s333_s14 = scalar_lea.hbm %s557_s1, 256 }
  0x50   : > { %p330_p5 = scmp.ne.s32.totalorder %s514_s29, %s329_s5  ;;  %p334_p0 = scmp.lt.u32.totalorder %s514_s29, %s557_s1 }
  0x51   : > { %p335_p1 = scmp.lt.u32.totalorder %s333_s14, %s329_s5  ;;  %p337_p6 = scmp.lt.u32.totalorder %s329_s5, %s514_s29 }
  0x52   : > { %p331_p8 = pnand %p330_p5, %p566_p11 }
  0x53   : > { %p336_p3 = por %p335_p1, %p334_p0 }
  0x54   : > { %p332_p9 = pneg %p331_p8 }
  0x55   : > { %p338_p12 = por %p337_p6, %p336_p3 }
  0x57   : > { %p339_p13 = pnand %p338_p12, %p332_p9 }
  0x59   : > { %342 = shalt.err (!%p339_p13)
}
  0x5a   : > { %239 = dma.vmem_to_hbm [thread:$0]  (%p566_p11), %s509_s26, 128, %s514_s29, %s142_s30  }
  0x5b PF: > { %s167_s21 = sand.u32 1, %s369_s6   ;;  %p567_p7 = scmp.ne.s32.totalorder %s562_s19, 0 }
  0x5c   : > { %p568_p10 = scmp.ge.s32.totalorder %s381_s9, 2  ;;  %s168_s22 = scalar_lea.sflag [#allocation4], %s167_s21 }
  0x5e   : > { %p246_p2 = pnand %p568_p10, %p567_p7 }
  0x60   : > { %364 = dma.done.wait (!%p246_p2), %s168_s22, 128  }
  0x61   : > { %366 = vsyncadd (!%p246_p2), %s168_s22, 4294967168  ;;  %p14_p4 = scmp.ge.s32.totalorder %s420_s12, 4   ;;  %s569_s6 = smov %s373_s7 }
  0x62   : > { %s570_s7 = smov %s377_s8  ;;  %s571_s8 = smov %s432_s15 }
  0x63   : > { %s572_s9 = smov %s420_s12  ;;  %16 = sbr.rel (!%p14_p4) target bundleno = 5 (0x5), region = 69 }
  0x6a   :  { %173 = vsyncpa [#allocation3], 1 }
  0x6b   :  { %175 = vsyncpa [#allocation3 + $0x1], 1 }
  0x6c   :  { %176 = vsyncpa [#allocation4], 1 }
  0x6d   :  { %178 = vsyncpa [#allocation4 + $0x1], 1 }

</bundles_post_ra>
